<compile_context>
chip_gen: v5e
topology: v5e:2x2
jax: 0.10.0
libtpu: 0.0.40
codegen_flags: <defaults>
</compile_context>

<pallas_src>
import math

import jax
import jax.numpy as jnp
from jax.experimental import pallas as pl
from jax.experimental.pallas import tpu as pltpu


def _pe_linear_kernel(x_ref, w_ref, bpe_ref, o_ref):
    # x_ref  : (1, tt, E)  one batch row, tt timesteps
    # w_ref  : (E, H)      resident weight (feed_emb.weight, pre-transposed)
    # bpe_ref: (1, H)      fused bias + selected PE row
    # o_ref  : (tt, H)     lane-dense window of the (T, B*H) transposed output
    acc = jnp.dot(x_ref[0], w_ref[...], preferred_element_type=jnp.float32)
    o_ref[...] = (acc + bpe_ref[...]).astype(o_ref.dtype)


def build_pe_table(max_len, hidden_size, dtype=jnp.float32):
    """Replicates the (slightly unusual) PE construction from the module."""
    position = jnp.arange(0, max_len, dtype=jnp.float32)[:, None]          # (L, 1)
    div_term = jnp.exp(
        jnp.arange(0, hidden_size, 2, dtype=jnp.float32)
        / hidden_size * (-math.log(10000.0))
    )[None, :]                                                             # (1, H/2)
    weight = position @ div_term                                           # (L, H/2)
    pe = jnp.zeros((max_len, hidden_size), dtype=jnp.float32)
    pe = pe.at[:, 0::2].set(jnp.sin(weight))
    pe = pe.at[:, 1::2].set(jnp.cos(weight))
    return pe.astype(dtype)                                                # (L, H)


def _pick_t_tile(T, E, H, itemsize=4, vmem_budget=32 * 1024 * 1024):
    """Largest T-tile such that (resident weight + double-buffered x/out tiles)
    stays within a conservative VMEM budget; capped at 512 rows (pipelining
    sweet spot) and rounded to a multiple of 8 sublanes."""
    resident = (E * H + H) * itemsize
    per_row = 2 * (E + H) * itemsize          # double-buffered x row + out row
    tt = max(8, (vmem_budget - resident) // max(per_row, 1))
    tt = min(int(tt), 512)
    if T <= tt:
        return T                               # block == full dim is always legal
    return max(8, (tt // 8) * 8)


def positional_encoding_forward(x, w, b, pe_table):
    """
    x        : (B, T, E)
    w        : (E, H)   -- feed_emb.weight transposed
    b        : (H,)     -- feed_emb.bias
    pe_table : (max_len, H)
    returns  : (T, B, H)
    """
    B, T, E = x.shape
    H = w.shape[1]
    assert T < pe_table.shape[0], "need T < max_len for pe[:, T, :] indexing"

    # Fuse bias + the single selected PE row (the module adds the SAME PE row,
    # index T, to every timestep: pe[:, x.size(1), :]).
    bias_pe = (b.astype(jnp.float32) + pe_table[T].astype(jnp.float32)).reshape(1, H)

    itemsize = jnp.dtype(x.dtype).itemsize
    tt = _pick_t_tile(T, E, H, itemsize=itemsize)
    grid = (B, pl.cdiv(T, tt))

    resident = (E * H + H) * 4
    needed = resident + 2 * tt * (E + H) * 4
    vmem_limit = int(min(64 * 1024 * 1024, max(2 * needed, 4 * 1024 * 1024)))

    cost = pl.CostEstimate(
        flops=2 * B * T * E * H,
        transcendentals=0,
        bytes_accessed=itemsize * (B * T * E + E * H + H + T * B * H),
    )

    # Output is written directly in the transposed (T, B, H) layout, flattened
    # to (T, B*H) so every output block is a lane-dense (tt, H) window.
    out_flat = pl.pallas_call(
        _pe_linear_kernel,
        out_shape=jax.ShapeDtypeStruct((T, B * H), x.dtype),
        grid=grid,
        in_specs=[
            pl.BlockSpec((1, tt, E), lambda bi, ti: (bi, ti, 0)),  # x tile
            pl.BlockSpec((E, H), lambda bi, ti: (0, 0)),           # resident weight
            pl.BlockSpec((1, H), lambda bi, ti: (0, 0)),           # fused bias+PE
        ],
        out_specs=pl.BlockSpec((tt, H), lambda bi, ti: (ti, bi)),  # fused transpose
        compiler_params=pltpu.CompilerParams(
            dimension_semantics=("parallel", "parallel"),
            vmem_limit_bytes=vmem_limit,
        ),
        cost_estimate=cost,
    )(x, w, bias_pe)

    out = out_flat.reshape(T, B, H)   # bitcast-compatible reshape, no transpose
    # TODO(synk): dropout is stochastic in train mode; implemented as identity (eval mode).
    return out


if __name__ == "__main__":
    # Small shapes consistent with the module; H chosen lane-dense (multiple of 128).
    B, T = 2, 8
    embed_size, hidden_size, max_len = 32, 128, 16
    dropout = 0.1  # unused (eval mode)

    key = jax.random.PRNGKey(0)
    kx, kw, kb = jax.random.split(key, 3)

    x = jax.random.normal(kx, (B, T, embed_size), dtype=jnp.float32)

    # Deterministic Linear init (mimics nn.Linear uniform(-1/sqrt(E), 1/sqrt(E))).
    bound = 1.0 / math.sqrt(embed_size)
    w = jax.random.uniform(kw, (embed_size, hidden_size), jnp.float32, -bound, bound)
    b = jax.random.uniform(kb, (hidden_size,), jnp.float32, -bound, bound)

    pe_table = build_pe_table(max_len, hidden_size)

    out = positional_encoding_forward(x, w, b, pe_table)
    jax.block_until_ready(out)

    # Reference check in plain JAX.
    ref = (x @ w + b) + pe_table[T][None, None, :]   # (B, T, H)
    ref = ref.transpose(1, 0, 2)                     # (T, B, H)
    assert out.shape == (T, B, hidden_size)
    assert jnp.allclose(out, ref, atol=1e-5, rtol=1e-5)

    print("KERNEL_OK")
</pallas_src>

<mosaic_0001>
module attributes {stable_mosaic.version = 11 : i64} {
  func.func @_pe_linear_kernel(%arg0: i32, %arg1: i32, %arg2: memref<1x8x32xf32, #tpu.memory_space<vmem>>, %arg3: memref<32x128xf32, #tpu.memory_space<vmem>>, %arg4: memref<1x128xf32, #tpu.memory_space<vmem>>, %arg5: memref<8x128xf32, #tpu.memory_space<vmem>>) attributes {dimension_semantics = [#tpu.dimension_semantics<parallel>, #tpu.dimension_semantics<parallel>], iteration_bounds = array<i64: 2, 1>, scalar_prefetch = 0 : i64, scratch_operands = 0 : i64, tpu.core_type = #tpu.core_type<tc>, window_params = [{transform_indices = @transform_0, window_bounds = array<i64: 1, 8, 32>}, {pipeline_mode = #tpu.pipeline_mode<synchronous>, transform_indices = @transform_1, window_bounds = array<i64: 32, 128>}, {pipeline_mode = #tpu.pipeline_mode<synchronous>, transform_indices = @transform_2, window_bounds = array<i64: 1, 128>}, {transform_indices = @transform_3, window_bounds = array<i64: 8, 128>}]} {
    %c0 = arith.constant 0 : index
    %c0_0 = arith.constant 0 : index
    %c0_1 = arith.constant 0 : index
    %0 = vector.load %arg2[%c0, %c0_0, %c0_1] : memref<1x8x32xf32, #tpu.memory_space<vmem>>, vector<1x8x32xf32>
    %1 = vector.shape_cast %0 : vector<1x8x32xf32> to vector<8x32xf32>
    %c0_2 = arith.constant 0 : index
    %c0_3 = arith.constant 0 : index
    %2 = vector.load %arg3[%c0_2, %c0_3] : memref<32x128xf32, #tpu.memory_space<vmem>>, vector<32x128xf32>
    %cst = arith.constant dense<0.000000e+00> : vector<8x128xf32>
    %3 = tpu.matmul %1, %2, %cst {dimension_numbers = #tpu.dot_dimension_numbers<[1], [0], [0], [1], [0, 0, 1, 1], [], []>} : vector<8x32xf32>, vector<32x128xf32>, vector<8x128xf32> -> vector<8x128xf32>
    %c0_4 = arith.constant 0 : index
    %c0_5 = arith.constant 0 : index
    %4 = vector.load %arg4[%c0_4, %c0_5] : memref<1x128xf32, #tpu.memory_space<vmem>>, vector<1x128xf32>
    %5 = vector.broadcast %4 : vector<1x128xf32> to vector<8x128xf32>
    %6 = arith.addf %3, %5 : vector<8x128xf32>
    %c0_6 = arith.constant 0 : index
    %c0_7 = arith.constant 0 : index
    %7 = vector.load %arg5[%c0_6, %c0_7] : memref<8x128xf32, #tpu.memory_space<vmem>>, vector<8x128xf32>
    tpu.vector_store %arg5[%c0_6, %c0_7], %6 {strides = array<i32>} : memref<8x128xf32, #tpu.memory_space<vmem>>, vector<8x128xf32>,
    return
  }
  func.func @transform_0(%arg0: i32, %arg1: i32) -> (i32, i32, i32) {
    %c0_i32 = arith.constant 0 : i32
    %c0_i32_0 = arith.constant 0 : i32
    return %arg0, %arg1, %c0_i32 : i32, i32, i32
  }
  func.func @transform_1(%arg0: i32, %arg1: i32) -> (i32, i32) {
    %c0_i32 = arith.constant 0 : i32
    %c0_i32_0 = arith.constant 0 : i32
    %c0_i32_1 = arith.constant 0 : i32
    return %c0_i32, %c0_i32_0 : i32, i32
  }
  func.func @transform_2(%arg0: i32, %arg1: i32) -> (i32, i32) {
    %c0_i32 = arith.constant 0 : i32
    %c0_i32_0 = arith.constant 0 : i32
    %c0_i32_1 = arith.constant 0 : i32
    return %c0_i32, %c0_i32_0 : i32, i32
  }
  func.func @transform_3(%arg0: i32, %arg1: i32) -> (i32, i32) {
    %c0_i32 = arith.constant 0 : i32
    return %arg1, %arg0 : i32, i32
  }
}

</mosaic_0001>

<bundles_post_ra>
// kernel: tpu_custom_call.1
= control target key start
LH: loop header
LB: loop body
LE: loop exit
PB: predicated region body
PF: predicated region fallthrough
CT: control target
= control target key end

     0   :  { %8 = vsyncpa [#allocation3], 0  ;;  %s774_s0 = inlined_call_operand.hbm [shape: f32[2,8,32], index: 0, kind: input, shape index: {}]   ;;  %s775_s1 = inlined_call_operand.hbm [shape: f32[32,128], index: 1, kind: input, shape index: {}]   ;;  %s776_s2 = inlined_call_operand.vmem [shape: f32[1,128], index: 2, kind: input, shape index: {}]   ;;  %s777_s3 = inlined_call_operand.hbm [shape: f32[8,256], index: 3, kind: output, shape index: {}]  }
   0x1   :  { %10 = vsyncpa [#allocation3 + $0x1], 0 }
   0x2   :  { %11 = vsyncpa [#allocation6], 0 }
   0x3   :  { %12 = vsyncpa [#allocation4], 0 }
   0x4   :  { %14 = vsyncpa [#allocation4 + $0x1], 0  ;;  %s628_s12 = smov 0   ;;  %s630_s13 = smov 0  }
   0x5   :  { %s632_s14 = smov 0   ;;  %s634_s15 = smov 0  }
   0x6   :  { %s636_s16 = smov 0   ;;  %s638_s17 = smov 0  }
   0x7 LB: > { %s365_s18 = sadd.s32 4294967295, %s603_s17   ;;  %p367_p0 = scmp.ge.s32.totalorder %s603_s17, 1  ;;  %s603_s17 = sphi %s638_s17, %s20_s17   ;;  %s599_s16 = sphi %s636_s16, %s788_s16   ;;  %s595_s15 = sphi %s634_s15, %s787_s15   ;;  %s591_s14 = sphi %s632_s14, %s786_s14   ;;  %s587_s13 = sphi %s630_s13, %s785_s13   ;;  %s583_s12 = sphi %s628_s12, %s784_s12  }
   0x8   : > { %p660_p1 = scmp.eq.s32.totalorder %s365_s18, 0  ;;  %p135_p2 = scmp.lt.s32.totalorder %s603_s17, 3 }
   0x9   : > { %s146_s22 = sshll.u32 %s775_s1, 4  ;;  %s605_s24 = smov [#allocation5]   ;;  %s147_s22 = int_to_ptr.hbm [resolvable:$true] %s146_s22 }
   0xa   : > { %p668_p3 = pnand %p367_p0, %p135_p2  ;;  %s148_s25 = sshll.u32 %s605_s24, 4  ;;  %s149_s25 = int_to_ptr.vmem [resolvable:$true] %s148_s25 }
   0xb   : > { %p369_p6 = scmp.ge.s32.totalorder %s603_s17, 2  ;;  %s606_s26 = smov 128  }
   0xc   : > { %p389_p4 = pneg %p668_p3  ;;  %s607_s27 = smov 8  }
   0xd   : > { %s366_s28 = sadd.s32 4294967294, %s603_s17   ;;  %s32_s29 = sadd.s32 1, %s599_s16 }
   0xe   : > { %p390_p5 = pnand %p389_p4, %p660_p1  ;;  %s41_s30 = sadd.s32 1, %s591_s14 }
   0xf   : > { %p34_p7 = scmp.ge.s32.totalorder %s32_s29, 2  ;;  %p48_p8 = scmp.ne.s32.totalorder %s591_s14, %s587_s13 }
  0x10   : > { %392 = dma.hbm_to_vmem [thread:$0]  (!%p390_p5), %s147_s22, 512, %s149_s25, [#allocation6], %s606_s26, %s606_s26, %s607_s27  }
  0x11   : > { %p49_p9 = scmp.eq.s32.totalorder %s603_s17, 0  ;;  %p54_p10 = scmp.ne.s32.totalorder %s587_s13, %s583_s12 }
  0x12   : > { %s790_s29 = smov (%p34_p7, %s32_s29), 0  ;;  %p122_p13 = scmp.eq.s32.totalorder %s365_s18, 1 }
  0x13   : > { %p687_p11 = por %p49_p9, %p48_p8  ;;  %p693_p12 = por %p660_p1, %p54_p10 }
  0x14   : > { %s36_s6 = ssub.s32 %s599_s16, %s790_s29  ;;  %p128_p2 = scmp.eq.s32.totalorder %s366_s28, 1 }
  0x15   : > { %p39_p0 = scmp.eq.s32.totalorder %s36_s6, 0  ;;  %p699_p4 = por %p122_p13, %p48_p8 }
  0x16   : > { %p402_p5 = scmp.lt.s32.totalorder %s603_s17, 2  ;;  %p707_p7 = por %p128_p2, %p54_p10 }
  0x17   : > { %s705_s8 = scalar_select %p39_p0, %s591_s14, %s41_s30  }
  0x18   : > { %s165_s10 = sand.u32 1, %s591_s14   ;;  %s371_s20 = sshll.u32 %s599_s16, 3 }
  0x19   : > { %s370_s11 = sshll.u32 %s165_s10, 3  ;;  %s174_s18 = scalar_lea.hbm %s774_s0, %s371_s20 }
  0x1a   : > { %s169_s24 = scalar_lea.vmem [#allocation2], %s370_s11  ;;  %s176_s26 = sshll.u32 %s174_s18, 4  ;;  %s177_s26 = int_to_ptr.hbm [resolvable:$true] %s176_s26 }
  0x1b   : > { %s178_s25 = sshll.u32 %s169_s24, 4  ;;  %p394_p8 = pnand %p402_p5, %p687_p11  ;;  %s179_s25 = int_to_ptr.vmem [resolvable:$true] %s178_s25 }
  0x1c   : > { %s166_s27 = scalar_lea.sflag [#allocation3], %s165_s10  ;;  %187 = sbr.rel (%p668_p3) target bundleno = 175 (0xaf), region = 32 }
  0x1d   : > { %396 = dma.hbm_to_vmem [thread:$0]  (!%p394_p8), %s177_s26, 128, %s179_s25, %s166_s27  }
  0x1e   : > { %s721_s28 = sand.u32 (!%p668_p3), 1, %s587_s13  }
  0x1f   : > { %s373_s30 = sshll.u32 (!%p668_p3), %s721_s28, 3  ;;  %s190_s6 = scalar_lea.sflag (!%p668_p3), [#allocation3], %s721_s28 }
  0x20   : > { %s193_s11 = scalar_lea.vmem (!%p668_p3), [#allocation2], %s373_s30 }
  0x21   : > { %570 = dma.done.wait (%p693_p12), %s190_s6, 128  }
  0x22   : > { %572 = vsyncadd (%p693_p12), %s190_s6, 4294967168 }
  0x23   : > { %574 = dma.done.wait (%p660_p1), [#allocation6], 512  }
  0x24   : > { %576 = vsyncadd (%p660_p1), [#allocation6], 4294966784  ;;  %v226_v0 = vld [vmem:[#allocation5 + $0x18] sm:$0xff]  ;;  %v225_v1 = vld [vmem:[#allocation5 + $0x10] sm:$0xff]  ;;  %vm231_vm0 = vcmask 261120   ;;  %s378_s23 = sshll.u32 %s595_s15, 3 }
  0x25   : > { %247 = vmatpush.msra.mxu0 %v226_v0  ;;  %v224_v2 = vld [vmem:[#allocation5 + $0x8] sm:$0xff]  ;;  %v223_v3 = vld [vmem:[#allocation5] sm:$0xff]  ;;  %v222_v4 = vld [vmem:[%s193_s11] sm:$0xff]  ;;  %s269_s19 = scalar_lea.hbm %s777_s3, %s378_s23  ;;  %s221_s21 = scalar_lea.vmem [#allocation7], %s373_s30 }
  0x26   : > { %v456_v5 = vld [vmem:[%s776_s2] ss:$0 sm:$0xff]  ;;  %s271_s22 = sshll.u32 %s221_s21, 4  ;;  %s273_s18 = sshll.u32 %s269_s19, 4  ;;  %s272_s22 = int_to_ptr.vmem [resolvable:$true] %s271_s22  ;;  %s274_s18 = int_to_ptr.hbm [resolvable:$true] %s273_s18 }
  0x27   : > { %248 = vmatpush.msra.mxu0 %v225_v1  ;;  %s257_s24 = scalar_lea.sflag [#allocation4], %s721_s28  ;;  %s531_s25 = sshra.s32 %s274_s18, 4  ;;  %s532_s25 = int_to_ptr.hbm [resolvable:$true] %s531_s25 }
  0x28   : > { %s533_s15 = scalar_lea.hbm %s532_s25, 8  ;;  %s537_s6 = scalar_lea.hbm %s777_s3, 16 }
  0x29   : > { %249 = vmatpush.msra.mxu0 %v224_v2  ;;  %p534_p1 = scmp.ne.s32.totalorder %s532_s25, %s533_s15  ;;  %p538_p10 = scmp.lt.s32.totalorder %s532_s25, %s777_s3 }
  0x2a   : > { %p539_p11 = scmp.lt.s32.totalorder %s537_s6, %s533_s15 }
  0x2b   : > { %250 = vmatpush.msra.mxu0 %v223_v3  ;;  %p535_p3 = pnand %p534_p1, %p699_p4 }
  0x2c   : > { %376 = vmatmul.msk.f32.vlgmr.msra.gmra.mxu0 %vm231_vm0, %v222_v4  ;;  %p540_p12 = por %p539_p11, %p538_p10 }
  0x2d   : > { %p536_p9 = pneg %p535_p3 }
  0x2f   : > { %p541_p13 = pnand %p540_p12, %p536_p9 }
  0xa9   : > { %v252_v6 = vpop.f32.mrf.mxu0 }
  0xaa   : > { %v253_v7 = vadd.f32 %v456_v5, %v252_v6 }
  0xac   : > { %255 = vst [vmem:[%s221_s21] sm:$0xff] %v253_v7 }
  0xad   : > { %544 = shalt.err (!%p541_p13)
}
  0xae   : > { %387 = dma.vmem_to_hbm [thread:$0]  (%p699_p4), %s272_s22, 128, %s274_s18, %s257_s24  }
  0xaf PF: > { %s285_s28 = sand.u32 1, %s583_s12   ;;  %p398_p0 = pnand %p369_p6, %p707_p7 }
  0xb0   : > { %s286_s23 = scalar_lea.sflag [#allocation4], %s285_s28 }
  0xb1   : > { %p399_p2 = pneg %p398_p0 }
  0xb3   : > { %578 = dma.done.wait (%p399_p2), %s286_s23, 128  }
  0xb4   : > { %580 = vsyncadd (%p399_p2), %s286_s23, 4294967168  ;;  %s20_s17 = sadd.s32 1, %s603_s17   ;;  %s784_s12 = smov %s587_s13 }
  0xb5   : > { %p17_p5 = scmp.ge.s32.totalorder %s20_s17, 4   ;;  %s785_s13 = smov %s591_s14 }
  0xb6   : > { %s786_s14 = smov %s705_s8  ;;  %s787_s15 = smov %s599_s16 }
  0xb7   : > { %s788_s16 = smov %s790_s29  ;;  %19 = sbr.rel (!%p17_p5) target bundleno = 7 (0x7), region = 81 }
  0xbc   :  { %292 = vsyncpa [#allocation3], 1 }
  0xbd   :  { %294 = vsyncpa [#allocation3 + $0x1], 1 }
  0xbe   :  { %295 = vsyncpa [#allocation6], 1 }
  0xbf   :  { %296 = vsyncpa [#allocation4], 1 }
  0xc0   :  { %298 = vsyncpa [#allocation4 + $0x1], 1 }

</bundles_post_ra>
